<compile_context>
chip_gen: v7x
topology: tpu7x:2x2x1
jax: 0.10.0
libtpu: 0.0.40
codegen_flags: <defaults>
</compile_context>

<pallas_src>
import functools

import jax
import jax.numpy as jnp
from jax import lax
from jax.experimental import pallas as pl
from jax.experimental.pallas import tpu as pltpu


# --------------------------------------------------------------------------- #
# Hardware queries (perf-only heuristics; safe fallbacks everywhere).
# --------------------------------------------------------------------------- #
def _vmem_capacity_bytes():
    try:
        return int(pltpu.get_tpu_info().vmem_capacity_bytes)
    except Exception:
        return 64 * 1024 * 1024  # conservative (v7x-sized) fallback


def _chip_generation():
    """Best-effort TPU generation (5, 6, 7); 0 if unknown."""
    cands = []
    try:
        cands.append(str(jax.devices()[0].device_kind))
    except Exception:
        pass
    try:
        cands.append(str(getattr(pltpu.get_tpu_info(), "chip_version", "")))
    except Exception:
        pass
    blob = " ".join(c.lower() for c in cands if c)
    for gen, toks in ((7, ("v7", "tpu7")), (6, ("v6", "tpu6")), (5, ("v5", "tpu5"))):
        if any(t in blob for t in toks):
            return gen
    return 0


# --------------------------------------------------------------------------- #
# Tiling helpers.
# --------------------------------------------------------------------------- #
def _round_up(x, m):
    return ((x + m - 1) // m) * m


def _cdiv(a, b):
    return -(-a // b)


def _pick_hchunk(hidden):
    """Hidden-axis chunk for the in-kernel chunked reduction (None -> fused)."""
    if hidden < 1024:
        return None
    for c in (512, 384, 256, 128):
        if hidden % c == 0:
            return c
    return None  # hidden not a multiple of 128: fall back to the fused path


def _per_row_vmem_bytes(hidden, in_bytes, out_bytes, hchunk, low_prec_apply):
    """VMEM bytes per tile row: double-buffered in/out tiles + live temps,
    using the lane-PADDED hidden (physical tile size, not logical)."""
    h_pad = _round_up(hidden, 128)
    per_row = 2 * h_pad * (in_bytes + out_bytes)          # double-buffered tiles
    if hchunk is not None:
        c_pad = _round_up(hchunk, 128)
        per_row += 3 * c_pad * 4                          # chunk-sized f32 temps
        per_row += 2 * c_pad * (out_bytes if low_prec_apply else 4)
        per_row += 4 * 4                                  # mean/rsigma columns
    else:
        n_f32 = 3 if low_prec_apply else 4                # xf, xc, sq, pre-cast y
        per_row += n_f32 * h_pad * 4
        if low_prec_apply:
            per_row += 2 * h_pad * out_bytes
    return per_row


def _choose_block_rows(n_rows, hidden, in_bytes, out_bytes, *, hchunk,
                       low_prec_apply):
    """Row-tile size: big enough to amortize the ~0.35 us/step overhead and hit
    the HBM roofline, small enough to fit this generation's VMEM, balanced
    across TensorCores on 2-TC chips (v7x)."""
    vmem_cap = _vmem_capacity_bytes()
    gen = _chip_generation()
    n_tc = 2 if gen == 7 else 1

    # Tile budget: <= ~75% of physical VMEM and never more than 48 MiB
    # (headroom for compiler scratch + gamma/beta; stays inside v7x's 64 MiB).
    budget = min((3 * vmem_cap) // 4, 48 * 1024 * 1024)
    per_row = _per_row_vmem_bytes(hidden, in_bytes, out_bytes, hchunk,
                                  low_prec_apply)

    align = 16 if min(in_bytes, out_bytes) <= 2 else 8
    # 512 rows already reaches ~85% of the HBM roofline; v5e gains nothing more.
    row_cap = 512 if gen == 5 else 1024

    tm = budget // max(per_row, 1)
    tm = min(tm, row_cap)
    tm = max(align, (tm // align) * align)

    if n_rows <= tm:
        if n_tc >= 2 and n_rows > align:
            # Two balanced blocks so both v7x TensorCores get work.
            tm = max(align, _round_up(_cdiv(n_rows, 2), align))
        else:
            # Single-TC chip (or tiny input): one exact full-size block
            # (block dim == full array dim is always a legal tiling).
            tm = n_rows
    elif n_tc >= 2:
        # Keep the number of grid steps even so the two TCs stay balanced.
        steps = _cdiv(n_rows, tm)
        if steps % 2:
            tm = max(align, _round_up(_cdiv(n_rows, steps + 1), align))
    return tm


# --------------------------------------------------------------------------- #
# Kernel.
# --------------------------------------------------------------------------- #
def _layer_norm_kernel(x_ref, w_ref, b_ref, o_ref, *, eps, hchunk,
                       low_prec_apply):
    # x_ref: (tm, H) tile of rows; w_ref / b_ref: (1, H).
    hidden = x_ref.shape[-1]
    apply_dtype = o_ref.dtype if low_prec_apply else jnp.float32

    if hchunk is None:
        # Fused path (small / non-128-multiple hidden): whole tile at once.
        xf = x_ref[...].astype(jnp.float32)
        mu = jnp.mean(xf, axis=-1, keepdims=True)
        xc = xf - mu
        var = jnp.mean(xc * xc, axis=-1, keepdims=True)
        rsigma = lax.rsqrt(var + eps)                        # EUP slot
        xn = (xc * rsigma).astype(apply_dtype)
        gamma = w_ref[...].astype(apply_dtype)
        beta = b_ref[...].astype(apply_dtype)
        o_ref[...] = (xn * gamma + beta).astype(o_ref.dtype)
        return

    # Chunked path (large hidden): never materialize (tm, H) f32 slabs.
    n_chunks = hidden // hchunk
    tm = x_ref.shape[0]
    inv_h = jnp.float32(1.0 / hidden)

    def _sl(c):
        return pl.ds(pl.multiple_of(c * hchunk, 128), hchunk)

    # Pass 1: row sums -> mean (f32 accumulation).
    def _sum_body(c, acc):
        return acc + jnp.sum(x_ref[:, _sl(c)].astype(jnp.float32),
                             axis=-1, keepdims=True)

    mu = lax.fori_loop(0, n_chunks, _sum_body,
                       jnp.zeros((tm, 1), jnp.float32)) * inv_h

    # Pass 2: sum of centered squares -> rsigma (two-pass: no cancellation).
    def _ssq_body(c, acc):
        xc = x_ref[:, _sl(c)].astype(jnp.float32) - mu
        return acc + jnp.sum(xc * xc, axis=-1, keepdims=True)

    ssq = lax.fori_loop(0, n_chunks, _ssq_body,
                        jnp.zeros((tm, 1), jnp.float32))
    rsigma = lax.rsqrt(ssq * inv_h + eps)                    # EUP slot

    # Pass 3: normalize + affine + store, chunk by chunk.
    @pl.loop(0, n_chunks)
    def _(c):
        sl = _sl(c)
        xn = ((x_ref[:, sl].astype(jnp.float32) - mu) * rsigma).astype(apply_dtype)
        gamma = w_ref[:, sl].astype(apply_dtype)
        beta = b_ref[:, sl].astype(apply_dtype)
        o_ref[:, sl] = (xn * gamma + beta).astype(o_ref.dtype)


# --------------------------------------------------------------------------- #
# Wrapper (== FastLayerNorm.forward semantics).
# --------------------------------------------------------------------------- #
def fast_layer_norm(x, weight, bias, eps=1e-5, *, block_rows=None):
    """y = (x - mean) * rsqrt(var + eps) * gamma + beta, over the last dim."""
    hidden = weight.shape[0]
    orig_shape = x.shape
    xmat = x.reshape((-1, hidden))
    n_rows = xmat.shape[0]

    in_bytes = jnp.dtype(x.dtype).itemsize
    out_bytes = in_bytes
    align = 16 if min(in_bytes, out_bytes) <= 2 else 8

    gen = _chip_generation()
    # bf16 apply phase only where the VALU is natively 16-bit (v6e / v7x);
    # on v5e it would just add cast ops. Stats always accumulate in f32.
    low_prec_apply = bool(x.dtype == jnp.bfloat16) and gen in (6, 7)
    hchunk = _pick_hchunk(hidden)

    if block_rows is None:
        tm = _choose_block_rows(n_rows, hidden, in_bytes, out_bytes,
                                hchunk=hchunk, low_prec_apply=low_prec_apply)
    else:
        # Align the override to the dtype's sublane packing (16 rows for bf16).
        tm = max(align, (int(block_rows) // align) * align)

    # Ragged last block is handled by Pallas (OOB rows are never written back),
    # so no jnp.pad (which would add a full extra HBM copy of x).
    grid = (pl.cdiv(n_rows, tm),)

    w2d = weight.reshape((1, hidden))
    b2d = bias.reshape((1, hidden))

    # Scoped-VMEM limit: tiles + counted temps (PADDED hidden) with 25% slack,
    # floored at 32 MiB (v5e's scoped default is only 16 MiB), capped at 90%
    # of this generation's physical VMEM.
    vmem_cap = _vmem_capacity_bytes()
    h_pad = _round_up(hidden, 128)
    per_row = _per_row_vmem_bytes(hidden, in_bytes, out_bytes, hchunk,
                                  low_prec_apply)
    need = tm * per_row + 4 * h_pad * 4                     # + gamma/beta bufs
    vmem_limit = int(min(max(int(1.25 * need), 32 * 1024 * 1024),
                         int(0.9 * vmem_cap)))

    kernel = functools.partial(_layer_norm_kernel, eps=float(eps),
                               hchunk=hchunk, low_prec_apply=low_prec_apply)

    # TODO(synk): for hidden < 128 the output stores are lane-masked (vst.msk);
    # a lane-dense repack (rows, hidden) -> (rows/k, k*hidden) with segmented
    # row-reductions would recover store bandwidth for tiny hidden sizes.
    out = pl.pallas_call(
        kernel,
        out_shape=jax.ShapeDtypeStruct((n_rows, hidden), x.dtype),
        grid_spec=pltpu.PrefetchScalarGridSpec(
            num_scalar_prefetch=0,
            grid=grid,
            in_specs=[
                pl.BlockSpec((tm, hidden), lambda i: (i, 0)),
                pl.BlockSpec((1, hidden), lambda i: (0, 0)),
                pl.BlockSpec((1, hidden), lambda i: (0, 0)),
            ],
            out_specs=pl.BlockSpec((tm, hidden), lambda i: (i, 0)),
        ),
        compiler_params=pltpu.CompilerParams(
            dimension_semantics=("parallel",),
            vmem_limit_bytes=vmem_limit,
        ),
    )(xmat, w2d, b2d)

    return out.reshape(orig_shape)


# --------------------------------------------------------------------------- #
# Reference + self-test.
# --------------------------------------------------------------------------- #
def _reference_layer_norm(x, weight, bias, eps):
    xf = x.astype(jnp.float32)
    mu = jnp.mean(xf, axis=-1, keepdims=True)
    var = jnp.mean((xf - mu) ** 2, axis=-1, keepdims=True)
    return ((xf - mu) * lax.rsqrt(var + eps) * weight.astype(jnp.float32)
            + bias.astype(jnp.float32))


if __name__ == "__main__":
    # Shapes implied by FastLayerNorm(hidden_size): x = (batch, seq, hidden).
    batch, seq, hidden = 2, 8, 32
    key = jax.random.PRNGKey(0)
    x = jax.random.normal(key, (batch, seq, hidden), dtype=jnp.float32)
    # reset_parameters(): weight = ones, bias = zeros.
    weight = jnp.ones((hidden,), dtype=jnp.float32)
    bias = jnp.zeros((hidden,), dtype=jnp.float32)

    y = fast_layer_norm(x, weight, bias, eps=1e-5)
    jax.block_until_ready(y)
    ref = _reference_layer_norm(x, weight, bias, 1e-5)
    assert jnp.allclose(y, ref, atol=1e-5, rtol=1e-5), "f32 fused path mismatch"

    # Second check: ragged row count + chunked hidden + bf16 apply path
    # (block_rows forced so the last block is ragged on every chip).
    h2 = 1024
    x2 = jax.random.normal(jax.random.PRNGKey(0), (3, 7, h2),
                           dtype=jnp.float32).astype(jnp.bfloat16)
    w2 = 1.0 + 0.1 * jax.random.normal(jax.random.PRNGKey(1), (h2,), jnp.float32)
    b2 = 0.1 * jax.random.normal(jax.random.PRNGKey(2), (h2,), jnp.float32)
    y2 = fast_layer_norm(x2, w2, b2, eps=1e-5, block_rows=16)
    jax.block_until_ready(y2)
    ref2 = _reference_layer_norm(x2, w2, b2, 1e-5)
    assert jnp.allclose(y2.astype(jnp.float32), ref2, atol=3e-2, rtol=3e-2), \
        "bf16 chunked/ragged path mismatch"

    print("KERNEL_OK")
</pallas_src>

<mosaic_0001>
module attributes {stable_mosaic.version = 11 : i64} {
  func.func @_layer_norm_kernel(%arg0: i32, %arg1: memref<16x32xf32, #tpu.memory_space<vmem>>, %arg2: memref<1x32xf32, #tpu.memory_space<vmem>>, %arg3: memref<1x32xf32, #tpu.memory_space<vmem>>, %arg4: memref<16x32xf32, #tpu.memory_space<vmem>>) attributes {dimension_semantics = [#tpu.dimension_semantics<parallel>], iteration_bounds = array<i64: 1>, scalar_prefetch = 0 : i64, scratch_operands = 0 : i64, tpu.core_type = #tpu.core_type<tc>, window_params = [{transform_indices = @transform_0, window_bounds = array<i64: 16, 32>}, {pipeline_mode = #tpu.pipeline_mode<synchronous>, transform_indices = @transform_1, window_bounds = array<i64: 1, 32>}, {pipeline_mode = #tpu.pipeline_mode<synchronous>, transform_indices = @transform_2, window_bounds = array<i64: 1, 32>}, {transform_indices = @transform_3, window_bounds = array<i64: 16, 32>}]} {
    %c0 = arith.constant 0 : index
    %c0_0 = arith.constant 0 : index
    %0 = vector.load %arg1[%c0, %c0_0] : memref<16x32xf32, #tpu.memory_space<vmem>>, vector<16x32xf32>
    %cst = arith.constant dense<0.000000e+00> : vector<16xf32>
    %1 = vector.multi_reduction <add>, %0, %cst [1] : vector<16x32xf32> to vector<16xf32>
    %2 = vector.shape_cast %1 : vector<16xf32> to vector<16x1xf32>
    %cst_1 = arith.constant 3.200000e+01 : f32
    %3 = vector.broadcast %cst_1 : f32 to vector<16x1xf32>
    %4 = arith.divf %2, %3 : vector<16x1xf32>
    %5 = vector.broadcast %4 : vector<16x1xf32> to vector<16x32xf32>
    %6 = arith.subf %0, %5 : vector<16x32xf32>
    %7 = arith.mulf %6, %6 : vector<16x32xf32>
    %cst_2 = arith.constant dense<0.000000e+00> : vector<16xf32>
    %8 = vector.multi_reduction <add>, %7, %cst_2 [1] : vector<16x32xf32> to vector<16xf32>
    %9 = vector.shape_cast %8 : vector<16xf32> to vector<16x1xf32>
    %cst_3 = arith.constant 3.200000e+01 : f32
    %10 = vector.broadcast %cst_3 : f32 to vector<16x1xf32>
    %11 = arith.divf %9, %10 : vector<16x1xf32>
    %cst_4 = arith.constant 9.99999974E-6 : f32
    %12 = vector.broadcast %cst_4 : f32 to vector<16x1xf32>
    %13 = arith.addf %11, %12 : vector<16x1xf32>
    %14 = math.rsqrt %13 : vector<16x1xf32>
    %15 = vector.broadcast %14 : vector<16x1xf32> to vector<16x32xf32>
    %16 = arith.mulf %6, %15 : vector<16x32xf32>
    %c0_5 = arith.constant 0 : index
    %c0_6 = arith.constant 0 : index
    %17 = vector.load %arg2[%c0_5, %c0_6] : memref<1x32xf32, #tpu.memory_space<vmem>>, vector<1x32xf32>
    %c0_7 = arith.constant 0 : index
    %c0_8 = arith.constant 0 : index
    %18 = vector.load %arg3[%c0_7, %c0_8] : memref<1x32xf32, #tpu.memory_space<vmem>>, vector<1x32xf32>
    %19 = vector.broadcast %17 : vector<1x32xf32> to vector<16x32xf32>
    %20 = arith.mulf %16, %19 : vector<16x32xf32>
    %21 = vector.broadcast %18 : vector<1x32xf32> to vector<16x32xf32>
    %22 = arith.addf %20, %21 : vector<16x32xf32>
    %c0_9 = arith.constant 0 : index
    %c0_10 = arith.constant 0 : index
    %23 = vector.load %arg4[%c0_9, %c0_10] : memref<16x32xf32, #tpu.memory_space<vmem>>, vector<16x32xf32>
    tpu.vector_store %arg4[%c0_9, %c0_10], %22 {strides = array<i32>} : memref<16x32xf32, #tpu.memory_space<vmem>>, vector<16x32xf32>,
    return
  }
  func.func @transform_0(%arg0: i32) -> (i32, i32) {
    %c0_i32 = arith.constant 0 : i32
    %c0_i32_0 = arith.constant 0 : i32
    return %arg0, %c0_i32 : i32, i32
  }
  func.func @transform_1(%arg0: i32) -> (i32, i32) {
    %c0_i32 = arith.constant 0 : i32
    %c0_i32_0 = arith.constant 0 : i32
    %c0_i32_1 = arith.constant 0 : i32
    return %c0_i32, %c0_i32_0 : i32, i32
  }
  func.func @transform_2(%arg0: i32) -> (i32, i32) {
    %c0_i32 = arith.constant 0 : i32
    %c0_i32_0 = arith.constant 0 : i32
    %c0_i32_1 = arith.constant 0 : i32
    return %c0_i32, %c0_i32_0 : i32, i32
  }
  func.func @transform_3(%arg0: i32) -> (i32, i32) {
    %c0_i32 = arith.constant 0 : i32
    %c0_i32_0 = arith.constant 0 : i32
    return %arg0, %c0_i32 : i32, i32
  }
}

</mosaic_0001>

<bundles_post_ra>
// kernel: tpu_custom_call.1
= control target key start
LH: loop header
LB: loop body
LE: loop exit
PB: predicated region body
PF: predicated region fallthrough
CT: control target
= control target key end

     0   :  { %8 = vsyncpa [#allocation3], 0  ;;  %s220_s0 = inlined_call_operand.hbm [shape: f32[16,32], index: 0, kind: input, shape index: {}]   ;;  %s221_s1 = inlined_call_operand.vmem [shape: f32[1,32], index: 1, kind: input, shape index: {}]   ;;  %s222_s2 = inlined_call_operand.vmem [shape: f32[1,32], index: 2, kind: input, shape index: {}]   ;;  %s223_s3 = inlined_call_operand.hbm [shape: f32[16,32], index: 3, kind: output, shape index: {}]  }
   0x1   :  { %9 = vsyncpa [#allocation4], 0  ;;  %s154_s12 = smov [#allocation2]   ;;  %s106_s16 = scalar_lea.hbm %s220_s0, 256 }
   0x2   :  { %s15_s13 = sshll.u32 %s154_s12, 4  ;;  %p107_p0 = scmp.ne.s32.totalorder %s220_s0, %s106_s16  ;;  %s16_s13 = int_to_ptr.vmem [resolvable:$true] %s15_s13 }
   0x3   :  { %p110_p1 = scmp.lt.u32.totalorder %s106_s16, %s220_s0 }
   0x5   :  { %p112_p2 = pnand %p110_p1, %p107_p0 }
   0x7   :  { %115 = shalt.err (!%p112_p2)
}
   0x8   :  { %s116_s21 = scalar_lea.vmem %s16_s13, 256  ;;  %p121_p4 = scmp.lt.s32.totalorder %s16_s13, %s16_s13 }
   0x9   :  { %p117_p3 = scmp.ne.s32.totalorder %s16_s13, %s116_s21  ;;  %p122_p5 = scmp.lt.s32.totalorder %s116_s21, %s116_s21 }
   0xb   :  { %p123_p6 = por %p122_p5, %p121_p4 }
   0xd   :  { %p124_p7 = pnand %p123_p6, %p117_p3 }
   0xf   :  { %127 = shalt.err (!%p124_p7)
}
  0x10   :  { %s155_s22 = smov 128   ;;  %s156_s23 = smov 8  }
  0x11   :  { %21 = dma.hbm_to_vmem [thread:$0]  %s220_s0, 256, %s16_s13, [#allocation3], %s155_s22, %s155_s22, %s156_s23  }
  0x12   :  { %150 = dma.done.wait [#allocation3], 256  }
  0x13   :  { %151 = vsyncadd [#allocation3], 4294967040  ;;  %vm31_vm0 = vcmask 261120   ;;  %v29_v0 = vld [vmem:[#allocation2] sm:$0xff]  ;;  %v30_v1 = vld [vmem:[#allocation2 + $0x8] sm:$0xff]  ;;  %s157_s29 = smov [#allocation5]  }
  0x14   :  { %v32_v2 = vsel %vm31_vm0, %v29_v0, 0.0  ;;  %v35_v3 = vsel %vm31_vm0, %v30_v1, 0.0  ;;  %v96_v21 = vld [vmem:[%s221_s1] ss:$0 sm:$0xff]  ;;  %s84_s30 = sshll.u32 %s157_s29, 4  ;;  %s85_s30 = int_to_ptr.vmem [resolvable:$true] %s84_s30 }
  0x15   :  { %33 = vadd.xlane.f32.xlu0 %v32_v2  ;;  %v97_v23 = vld [vmem:[%s222_s2] ss:$0 sm:$0xff]  ;;  %s128_s4 = scalar_lea.vmem %s85_s30, 256  ;;  %p133_p9 = scmp.lt.s32.totalorder %s85_s30, %s85_s30 }
  0x16   :  { %p129_p8 = scmp.ne.s32.totalorder %s85_s30, %s128_s4  ;;  %p134_p10 = scmp.lt.s32.totalorder %s128_s4, %s128_s4 }
  0x18   :  { %p135_p11 = por %p134_p10, %p133_p9 }
  0x19   :  { %36 = vadd.xlane.f32.xlu0 %v35_v3 }
  0x1a   :  { %p136_p12 = pnand %p135_p11, %p129_p8 }
  0xa2   :  { %v34_v4 = vpop.xlane.xlu0 %33 }
  0xa3   :  { %v39_v5 = vmul.f32 0.03125, %v34_v4 }
  0xa5   :  { %v41_v6 = vsub.f32 %v29_v0, %v39_v5 }
  0xa6   :  { %v37_v7 = vpop.xlane.xlu0 %36 }
  0xa7   :  { %v40_v8 = vmul.f32 0.03125, %v37_v7  ;;  %v43_v9 = vmul.f32 %v41_v6, %v41_v6 }
  0xa9   :  { %v42_v10 = vsub.f32 %v30_v1, %v40_v8  ;;  %v45_v11 = vsel %vm31_vm0, %v43_v9, 0.0 }
  0xaa   :  { %46 = vadd.xlane.f32.xlu1 %v45_v11 }
  0xab   :  { %v44_v12 = vmul.f32 %v42_v10, %v42_v10 }
  0xad   :  { %v48_v13 = vsel %vm31_vm0, %v44_v12, 0.0 }
  0xae   :  { %49 = vadd.xlane.f32.xlu1 %v48_v13 }
 0x137   :  { %v47_v14 = vpop.xlane.xlu1 %46 }
 0x138   :  { %v51_v15 = vmul.f32 0.03125, %v47_v14 }
 0x13a   :  { %v53_v16 = vadd.f32 1e-05, %v51_v15 }
 0x13b   :  { %v50_v17 = vpop.xlane.xlu1 %49 }
 0x13c   :  { %102 = vrsqrt.f32 %v53_v16  ;;  %v52_v18 = vmul.f32 0.03125, %v50_v17 }
 0x13e   :  { %v54_v19 = vadd.f32 1e-05, %v52_v18 }
 0x140   :  { %104 = vrsqrt.f32 %v54_v19 }
 0x146   :  { %v103_v20 = vpop.eup %102 }
 0x147   :  { %v57_v22 = vmul.f32 %v103_v20, %v41_v6 }
 0x149   :  { %v67_v24 = vmul.f32 %v96_v21, %v57_v22 }
 0x14a   :  { %v105_v25 = vpop.eup %104 }
 0x14b   :  { %v58_v26 = vmul.f32 %v105_v25, %v42_v10  ;;  %v75_v27 = vadd.f32 %v97_v23, %v67_v24 }
 0x14d   :  { %v68_v28 = vmul.f32 %v96_v21, %v58_v26  ;;  %77 = vst.msk [vmem:[#allocation5] sm:$0xff] %vm31_vm0, %v75_v27 }
 0x14f   :  { %v76_v29 = vadd.f32 %v97_v23, %v68_v28 }
 0x151   :  { %78 = vst.msk [vmem:[#allocation5 + $0x8] sm:$0xff] %vm31_vm0, %v76_v29 }
 0x152   :  { %139 = shalt.err (!%p136_p12)
}
 0x153   :  { %s140_s5 = scalar_lea.hbm %s223_s3, 256 }
 0x154   :  { %p141_p13 = scmp.ne.s32.totalorder %s223_s3, %s140_s5  ;;  %p144_p0 = scmp.lt.u32.totalorder %s140_s5, %s223_s3 }
 0x156   :  { %p146_p1 = pnand %p144_p0, %p141_p13 }
 0x158   :  { %149 = shalt.err (!%p146_p1)
}
 0x159   :  { %90 = dma.vmem_to_hbm [thread:$0]  %s85_s30, 256, %s223_s3, [#allocation4], %s155_s22, %s155_s22, %s156_s23  }
 0x15a   :  { %152 = dma.done.wait [#allocation4], 256  }
 0x15b   :  { %153 = vsyncadd [#allocation4], 4294967040 }
 0x15c   :  { %94 = vsyncpa [#allocation3], 1 }
 0x15d   :  { %95 = vsyncpa [#allocation4], 1 }

</bundles_post_ra>
